<compile_context>
chip_gen: v6e
topology: v6e:2x2x1
jax: 0.10.0
libtpu: 0.0.40
codegen_flags: <defaults>
</compile_context>

<pallas_src>
import functools

import jax
import jax.numpy as jnp
from jax import lax
from jax.experimental import pallas as pl
from jax.experimental.pallas import tpu as pltpu

_LANES = 128
_SUBLANES = 8
_CHUNK_ROWS = 512                       # per-chunk reduction granularity
_TARGET_BLOCK_BYTES = 4 * 1024 * 1024   # ~4 MiB per input per grid step
_NUM_SPLITS = 2                         # v7x has 2 TensorCores


def _accumulate_chunk(acc_ref, p_ref, t_ref, row0, nrows, *, blk, block_rows,
                      rows_valid, masked):
    """Accumulate sum(p*t) and sum(p+t) of rows [row0, row0+nrows) into acc."""
    p = p_ref[pl.ds(row0, nrows), :].astype(jnp.float32)
    t = t_ref[pl.ds(row0, nrows), :].astype(jnp.float32)
    if masked:
        # Rows at/after rows_valid are stale / duplicate data (grid overhang);
        # zero them BEFORE any arithmetic so garbage bits cannot propagate.
        ridx = lax.broadcasted_iota(jnp.int32, p.shape, 0)
        valid = (blk * block_rows + row0 + ridx) < rows_valid
        p = jnp.where(valid, p, 0.0)
        t = jnp.where(valid, t, 0.0)
    pt = p * t            # intersection partials
    u = p + t             # fused union partials (sum(p) + sum(t))
    if nrows % _SUBLANES == 0:
        # Tile-aligned partial reduction into the small resident accumulators.
        acc_ref[0, 0] += pt.reshape(-1, _SUBLANES, _LANES).sum(axis=0)
        acc_ref[0, 1] += u.reshape(-1, _SUBLANES, _LANES).sum(axis=0)
    else:
        # Tiny-input fallback (single block whose row count isn't 8-aligned).
        acc_ref[0, 0, 0:1, :] += pt.sum(axis=0, keepdims=True)
        acc_ref[0, 1, 0:1, :] += u.sum(axis=0, keepdims=True)


def _dice_partial_kernel(p_ref, t_ref, acc_ref, *, block_rows, chunk_rows,
                         rows_valid, steps_per_core, full_blocks):
    """Per-core streaming partial sums for the Dice loss.

    p_ref, t_ref : (block_rows, 128) tiles of the flattened pred / target.
    acc_ref      : (1, 2, 8, 128) resident output block:
                   [:, 0] = sum(pred * target) partials, [:, 1] = sum(pred + target).
    """
    c = pl.program_id(0)            # core split ("parallel")
    s = pl.program_id(1)            # streaming step ("arbitrary")
    blk = c * steps_per_core + s    # unclamped logical row-block index

    @pl.when(s == 0)
    def _():
        acc_ref[...] = jnp.zeros_like(acc_ref)

    n_full_chunks = block_rows // chunk_rows
    tail_rows = block_rows - n_full_chunks * chunk_rows

    def run(masked):
        acc = functools.partial(_accumulate_chunk, acc_ref, p_ref, t_ref,
                                blk=blk, block_rows=block_rows,
                                rows_valid=rows_valid, masked=masked)
        if n_full_chunks == 1:
            acc(0, chunk_rows)
        elif n_full_chunks > 1:
            def body(g, carry):
                r0 = pl.multiple_of(g * chunk_rows, chunk_rows)
                acc(r0, chunk_rows)
                return carry
            lax.fori_loop(0, n_full_chunks, body, 0)
        if tail_rows > 0:
            acc(n_full_chunks * chunk_rows, tail_rows)

    # Gate the edge mask: only blocks that overhang the valid row range pay
    # for the iota + compare + where; interior blocks take the cheap path.
    @pl.when(blk < full_blocks)
    def _():
        run(masked=False)

    @pl.when(blk >= full_blocks)
    def _():
        run(masked=True)


def dice_loss(pred, target, smooth=1.0):
    """Pallas implementation of DiceLoss.forward(pred, target)."""
    assert pred.shape == target.shape, "pred/target shape mismatch"

    # Flatten in native dtype (cast to f32 happens in-kernel, so bf16 inputs
    # stream half the HBM bytes).
    p_flat = jnp.reshape(pred, (-1,))
    t_flat = jnp.reshape(target, (-1,))
    n = p_flat.shape[0]
    assert n > 0, "empty input"

    lane_pad = (-n) % _LANES
    if lane_pad:
        # TODO(synk): rare ragged case (n % 128 != 0) still materializes a
        # padded copy; could instead sum the <128-element tail in the wrapper.
        p_flat = jnp.pad(p_flat, (0, lane_pad))
        t_flat = jnp.pad(t_flat, (0, lane_pad))
    rows = (n + lane_pad) // _LANES     # zero pad leaves all sums unchanged

    p2d = p_flat.reshape(rows, _LANES)
    t2d = t_flat.reshape(rows, _LANES)

    # Dtype-aware block size: ~_TARGET_BLOCK_BYTES per input per grid step,
    # rounded to a multiple of the chunk size (bf16 gets 2x the rows of f32).
    itemsize = max(jnp.dtype(pred.dtype).itemsize, jnp.dtype(target.dtype).itemsize)
    budget_rows = max(
        _CHUNK_ROWS,
        (_TARGET_BLOCK_BYTES // (_LANES * itemsize)) // _CHUNK_ROWS * _CHUNK_ROWS)
    block_rows = budget_rows if rows >= budget_rows else rows
    chunk_rows = min(_CHUNK_ROWS, block_rows)

    total_blocks = pl.cdiv(rows, block_rows)   # blocks needed to cover rows
    full_blocks = rows // block_rows           # blocks with no overhang
    num_splits = _NUM_SPLITS if total_blocks >= _NUM_SPLITS else 1
    steps_per_core = pl.cdiv(total_blocks, num_splits)

    def in_index_map(c, s):
        # Clamp so overhang steps (odd split) re-read the last valid block;
        # their contribution is masked to zero in-kernel.
        return (jnp.minimum(c * steps_per_core + s, total_blocks - 1), 0)

    kernel = functools.partial(
        _dice_partial_kernel,
        block_rows=block_rows,
        chunk_rows=chunk_rows,
        rows_valid=rows,
        steps_per_core=steps_per_core,
        full_blocks=full_blocks,
    )

    partials = pl.pallas_call(
        kernel,
        out_shape=jax.ShapeDtypeStruct((num_splits, 2, _SUBLANES, _LANES),
                                       jnp.float32),
        grid_spec=pltpu.PrefetchScalarGridSpec(
            num_scalar_prefetch=0,
            grid=(num_splits, steps_per_core),
            in_specs=[
                pl.BlockSpec((block_rows, _LANES), in_index_map),
                pl.BlockSpec((block_rows, _LANES), in_index_map),
            ],
            out_specs=pl.BlockSpec((1, 2, _SUBLANES, _LANES),
                                   lambda c, s: (c, 0, 0, 0)),
        ),
        compiler_params=pltpu.CompilerParams(
            dimension_semantics=("parallel", "arbitrary"),
            vmem_limit_bytes=40 * 1024 * 1024,   # 2 in x 2 buf x 4 MiB + slack
        ),
    )(p2d, t2d)

    # Final (tiny) dice combine in the wrapper, over all cores' partials.
    intersection = jnp.sum(partials[:, 0])
    union = jnp.sum(partials[:, 1])
    dice = (2.0 * intersection + float(smooth)) / (union + float(smooth))
    return 1.0 - dice


def dice_loss_ref(pred, target, smooth=1.0):
    """Pure-JAX reference (mirrors the PyTorch module)."""
    p = jnp.reshape(pred, (-1,)).astype(jnp.float32)
    t = jnp.reshape(target, (-1,)).astype(jnp.float32)
    intersection = jnp.sum(p * t)
    union = jnp.sum(p) + jnp.sum(t)
    dice = (2.0 * intersection + smooth) / (union + smooth)
    return 1.0 - dice


if __name__ == "__main__":
    key = jax.random.PRNGKey(0)
    kp, kt = jax.random.split(key)

    # NCHW inputs, as a UNet segmentation head would produce: (N, C, H, W)
    pred = jax.nn.sigmoid(jax.random.normal(kp, (2, 4, 16, 16), dtype=jnp.float32))
    target = (jax.random.uniform(kt, (2, 4, 16, 16)) > 0.5).astype(jnp.float32)

    loss = jax.block_until_ready(dice_loss(pred, target, smooth=1.0))
    ref = jax.block_until_ready(dice_loss_ref(pred, target, smooth=1.0))
    assert jnp.allclose(loss, ref, rtol=1e-4, atol=1e-5), (loss, ref)

    # Odd row count (75 rows): exercises the single-block, non-8-aligned path.
    kp2, kt2 = jax.random.split(jax.random.PRNGKey(1))
    pred2 = jax.nn.sigmoid(jax.random.normal(kp2, (2, 3, 40, 40), dtype=jnp.float32))
    target2 = (jax.random.uniform(kt2, (2, 3, 40, 40)) > 0.5).astype(jnp.float32)
    loss2 = jax.block_until_ready(dice_loss(pred2, target2))
    ref2 = jax.block_until_ready(dice_loss_ref(pred2, target2))
    assert jnp.allclose(loss2, ref2, rtol=1e-4, atol=1e-5), (loss2, ref2)

    # Multi-block case (9000 rows > 8192): exercises the two-core split,
    # chunked fori_loop accumulation, and the gated overhang mask.
    kp3, kt3 = jax.random.split(jax.random.PRNGKey(2))
    pred3 = jax.nn.sigmoid(jax.random.normal(kp3, (1, 5, 480, 480), dtype=jnp.float32))
    target3 = (jax.random.uniform(kt3, (1, 5, 480, 480)) > 0.5).astype(jnp.float32)
    loss3 = jax.block_until_ready(dice_loss(pred3, target3))
    ref3 = jax.block_until_ready(dice_loss_ref(pred3, target3))
    assert jnp.allclose(loss3, ref3, rtol=1e-4, atol=1e-5), (loss3, ref3)

    print("KERNEL_OK")
</pallas_src>

<mosaic_0001>
module attributes {stable_mosaic.version = 11 : i64} {
  func.func @_dice_partial_kernel(%arg0: i32, %arg1: i32, %arg2: memref<16x128xf32, #tpu.memory_space<vmem>>, %arg3: memref<16x128xf32, #tpu.memory_space<vmem>>, %arg4: memref<1x2x8x128xf32, #tpu.memory_space<vmem>>) attributes {dimension_semantics = [#tpu.dimension_semantics<parallel>, #tpu.dimension_semantics<arbitrary>], iteration_bounds = array<i64: 1, 1>, scalar_prefetch = 0 : i64, scratch_operands = 0 : i64, tpu.core_type = #tpu.core_type<tc>, window_params = [{transform_indices = @transform_0, window_bounds = array<i64: 16, 128>}, {transform_indices = @transform_1, window_bounds = array<i64: 16, 128>}, {transform_indices = @transform_2, window_bounds = array<i64: 1, 2, 8, 128>}]} {
    %c1_i32 = arith.constant 1 : i32
    %0 = arith.muli %arg0, %c1_i32 : i32
    %1 = arith.addi %0, %arg1 : i32
    %c0_i32 = arith.constant 0 : i32
    %2 = arith.cmpi eq, %arg1, %c0_i32 : i32
    %3 = arith.extui %2 : i1 to i32
    %c0_i32_0 = arith.constant 0 : i32
    %4 = arith.cmpi ne, %3, %c0_i32_0 : i32
    scf.if %4 {
      %cst = arith.constant 0.000000e+00 : f32
      %11 = vector.broadcast %cst : f32 to vector<1x2x8x128xf32>
      %c0 = arith.constant 0 : index
      %c0_5 = arith.constant 0 : index
      %c0_6 = arith.constant 0 : index
      %c0_7 = arith.constant 0 : index
      %12 = vector.load %arg4[%c0, %c0_5, %c0_6, %c0_7] : memref<1x2x8x128xf32, #tpu.memory_space<vmem>>, vector<1x2x8x128xf32>
      tpu.vector_store %arg4[%c0, %c0_5, %c0_6, %c0_7], %11 {strides = array<i32>} : memref<1x2x8x128xf32, #tpu.memory_space<vmem>>, vector<1x2x8x128xf32>,
    } else {
    }
    %c1_i32_1 = arith.constant 1 : i32
    %5 = arith.cmpi slt, %1, %c1_i32_1 : i32
    %6 = arith.extui %5 : i1 to i32
    %c0_i32_2 = arith.constant 0 : i32
    %7 = arith.cmpi ne, %6, %c0_i32_2 : i32
    scf.if %7 {
      %c0 = arith.constant 0 : index
      %c0_5 = arith.constant 0 : index
      %11 = vector.load %arg2[%c0, %c0_5] : memref<16x128xf32, #tpu.memory_space<vmem>>, vector<16x128xf32>
      %c0_6 = arith.constant 0 : index
      %c0_7 = arith.constant 0 : index
      %12 = vector.load %arg3[%c0_6, %c0_7] : memref<16x128xf32, #tpu.memory_space<vmem>>, vector<16x128xf32>
      %13 = arith.mulf %11, %12 : vector<16x128xf32>
      %14 = arith.addf %11, %12 : vector<16x128xf32>
      %c0_8 = arith.constant 0 : index
      %c0_9 = arith.constant 0 : index
      %c0_10 = arith.constant 0 : index
      %c0_11 = arith.constant 0 : index
      %15 = vector.load %arg4[%c0_8, %c0_9, %c0_10, %c0_11] : memref<1x2x8x128xf32, #tpu.memory_space<vmem>>, vector<1x1x8x128xf32>
      %16 = vector.shape_cast %15 : vector<1x1x8x128xf32> to vector<8x128xf32>
      %17 = vector.shape_cast %13 : vector<16x128xf32> to vector<2x8x128xf32>
      %cst = arith.constant dense<0.000000e+00> : vector<8x128xf32>
      %18 = vector.multi_reduction <add>, %17, %cst [0] : vector<2x8x128xf32> to vector<8x128xf32>
      %19 = arith.addf %16, %18 : vector<8x128xf32>
      %c0_12 = arith.constant 0 : index
      %c0_13 = arith.constant 0 : index
      %c0_14 = arith.constant 0 : index
      %c0_15 = arith.constant 0 : index
      %20 = vector.load %arg4[%c0_12, %c0_13, %c0_14, %c0_15] : memref<1x2x8x128xf32, #tpu.memory_space<vmem>>, vector<1x1x8x128xf32>
      %21 = vector.shape_cast %20 : vector<1x1x8x128xf32> to vector<8x128xf32>
      %22 = vector.shape_cast %19 : vector<8x128xf32> to vector<1x1x8x128xf32>
      tpu.vector_store %arg4[%c0_12, %c0_13, %c0_14, %c0_15], %22 {strides = array<i32>} : memref<1x2x8x128xf32, #tpu.memory_space<vmem>>, vector<1x1x8x128xf32>,
      %c0_16 = arith.constant 0 : index
      %c1 = arith.constant 1 : index
      %c0_17 = arith.constant 0 : index
      %c0_18 = arith.constant 0 : index
      %23 = vector.load %arg4[%c0_16, %c1, %c0_17, %c0_18] : memref<1x2x8x128xf32, #tpu.memory_space<vmem>>, vector<1x1x8x128xf32>
      %24 = vector.shape_cast %23 : vector<1x1x8x128xf32> to vector<8x128xf32>
      %25 = vector.shape_cast %14 : vector<16x128xf32> to vector<2x8x128xf32>
      %cst_19 = arith.constant dense<0.000000e+00> : vector<8x128xf32>
      %26 = vector.multi_reduction <add>, %25, %cst_19 [0] : vector<2x8x128xf32> to vector<8x128xf32>
      %27 = arith.addf %24, %26 : vector<8x128xf32>
      %c0_20 = arith.constant 0 : index
      %c1_21 = arith.constant 1 : index
      %c0_22 = arith.constant 0 : index
      %c0_23 = arith.constant 0 : index
      %28 = vector.load %arg4[%c0_20, %c1_21, %c0_22, %c0_23] : memref<1x2x8x128xf32, #tpu.memory_space<vmem>>, vector<1x1x8x128xf32>
      %29 = vector.shape_cast %28 : vector<1x1x8x128xf32> to vector<8x128xf32>
      %30 = vector.shape_cast %27 : vector<8x128xf32> to vector<1x1x8x128xf32>
      tpu.vector_store %arg4[%c0_20, %c1_21, %c0_22, %c0_23], %30 {strides = array<i32>} : memref<1x2x8x128xf32, #tpu.memory_space<vmem>>, vector<1x1x8x128xf32>,
    } else {
    }
    %c1_i32_3 = arith.constant 1 : i32
    %8 = arith.cmpi sge, %1, %c1_i32_3 : i32
    %9 = arith.extui %8 : i1 to i32
    %c0_i32_4 = arith.constant 0 : i32
    %10 = arith.cmpi ne, %9, %c0_i32_4 : i32
    scf.if %10 {
      %c0 = arith.constant 0 : index
      %c0_5 = arith.constant 0 : index
      %11 = vector.load %arg2[%c0, %c0_5] : memref<16x128xf32, #tpu.memory_space<vmem>>, vector<16x128xf32>
      %c0_6 = arith.constant 0 : index
      %c0_7 = arith.constant 0 : index
      %12 = vector.load %arg3[%c0_6, %c0_7] : memref<16x128xf32, #tpu.memory_space<vmem>>, vector<16x128xf32>
      %13 = tpu.iota {dimensions = array<i32: 0>} : vector<16x128xi32>
      %c16_i32 = arith.constant 16 : i32
      %14 = arith.muli %1, %c16_i32 : i32
      %c0_i32_8 = arith.constant 0 : i32
      %15 = arith.addi %14, %c0_i32_8 : i32
      %16 = vector.broadcast %15 : i32 to vector<16x128xi32>
      %17 = arith.addi %16, %13 : vector<16x128xi32>
      %c16_i32_9 = arith.constant 16 : i32
      %18 = vector.broadcast %c16_i32_9 : i32 to vector<16x128xi32>
      %19 = arith.cmpi slt, %17, %18 : vector<16x128xi32>
      %cst = arith.constant 0.000000e+00 : f32
      %20 = vector.broadcast %cst : f32 to vector<16x128xf32>
      %21 = arith.select %19, %11, %20 : vector<16x128xi1>, vector<16x128xf32>
      %cst_10 = arith.constant 0.000000e+00 : f32
      %22 = vector.broadcast %cst_10 : f32 to vector<16x128xf32>
      %23 = arith.select %19, %12, %22 : vector<16x128xi1>, vector<16x128xf32>
      %24 = arith.mulf %21, %23 : vector<16x128xf32>
      %25 = arith.addf %21, %23 : vector<16x128xf32>
      %c0_11 = arith.constant 0 : index
      %c0_12 = arith.constant 0 : index
      %c0_13 = arith.constant 0 : index
      %c0_14 = arith.constant 0 : index
      %26 = vector.load %arg4[%c0_11, %c0_12, %c0_13, %c0_14] : memref<1x2x8x128xf32, #tpu.memory_space<vmem>>, vector<1x1x8x128xf32>
      %27 = vector.shape_cast %26 : vector<1x1x8x128xf32> to vector<8x128xf32>
      %28 = vector.shape_cast %24 : vector<16x128xf32> to vector<2x8x128xf32>
      %cst_15 = arith.constant dense<0.000000e+00> : vector<8x128xf32>
      %29 = vector.multi_reduction <add>, %28, %cst_15 [0] : vector<2x8x128xf32> to vector<8x128xf32>
      %30 = arith.addf %27, %29 : vector<8x128xf32>
      %c0_16 = arith.constant 0 : index
      %c0_17 = arith.constant 0 : index
      %c0_18 = arith.constant 0 : index
      %c0_19 = arith.constant 0 : index
      %31 = vector.load %arg4[%c0_16, %c0_17, %c0_18, %c0_19] : memref<1x2x8x128xf32, #tpu.memory_space<vmem>>, vector<1x1x8x128xf32>
      %32 = vector.shape_cast %31 : vector<1x1x8x128xf32> to vector<8x128xf32>
      %33 = vector.shape_cast %30 : vector<8x128xf32> to vector<1x1x8x128xf32>
      tpu.vector_store %arg4[%c0_16, %c0_17, %c0_18, %c0_19], %33 {strides = array<i32>} : memref<1x2x8x128xf32, #tpu.memory_space<vmem>>, vector<1x1x8x128xf32>,
      %c0_20 = arith.constant 0 : index
      %c1 = arith.constant 1 : index
      %c0_21 = arith.constant 0 : index
      %c0_22 = arith.constant 0 : index
      %34 = vector.load %arg4[%c0_20, %c1, %c0_21, %c0_22] : memref<1x2x8x128xf32, #tpu.memory_space<vmem>>, vector<1x1x8x128xf32>
      %35 = vector.shape_cast %34 : vector<1x1x8x128xf32> to vector<8x128xf32>
      %36 = vector.shape_cast %25 : vector<16x128xf32> to vector<2x8x128xf32>
      %cst_23 = arith.constant dense<0.000000e+00> : vector<8x128xf32>
      %37 = vector.multi_reduction <add>, %36, %cst_23 [0] : vector<2x8x128xf32> to vector<8x128xf32>
      %38 = arith.addf %35, %37 : vector<8x128xf32>
      %c0_24 = arith.constant 0 : index
      %c1_25 = arith.constant 1 : index
      %c0_26 = arith.constant 0 : index
      %c0_27 = arith.constant 0 : index
      %39 = vector.load %arg4[%c0_24, %c1_25, %c0_26, %c0_27] : memref<1x2x8x128xf32, #tpu.memory_space<vmem>>, vector<1x1x8x128xf32>
      %40 = vector.shape_cast %39 : vector<1x1x8x128xf32> to vector<8x128xf32>
      %41 = vector.shape_cast %38 : vector<8x128xf32> to vector<1x1x8x128xf32>
      tpu.vector_store %arg4[%c0_24, %c1_25, %c0_26, %c0_27], %41 {strides = array<i32>} : memref<1x2x8x128xf32, #tpu.memory_space<vmem>>, vector<1x1x8x128xf32>,
    } else {
    }
    return
  }
  func.func @transform_0(%arg0: i32, %arg1: i32) -> (i32, i32) {
    %c1_i32 = arith.constant 1 : i32
    %0 = arith.muli %arg0, %c1_i32 : i32
    %1 = arith.addi %0, %arg1 : i32
    %c0_i32 = arith.constant 0 : i32
    %2 = arith.minsi %1, %c0_i32 : i32
    %c0_i32_0 = arith.constant 0 : i32
    %c0_i32_1 = arith.constant 0 : i32
    return %2, %c0_i32_0 : i32, i32
  }
  func.func @transform_1(%arg0: i32, %arg1: i32) -> (i32, i32) {
    %c1_i32 = arith.constant 1 : i32
    %0 = arith.muli %arg0, %c1_i32 : i32
    %1 = arith.addi %0, %arg1 : i32
    %c0_i32 = arith.constant 0 : i32
    %2 = arith.minsi %1, %c0_i32 : i32
    %c0_i32_0 = arith.constant 0 : i32
    %c0_i32_1 = arith.constant 0 : i32
    return %2, %c0_i32_0 : i32, i32
  }
  func.func @transform_2(%arg0: i32, %arg1: i32) -> (i32, i32, i32, i32) {
    %c0_i32 = arith.constant 0 : i32
    %c0_i32_0 = arith.constant 0 : i32
    %c0_i32_1 = arith.constant 0 : i32
    %c0_i32_2 = arith.constant 0 : i32
    return %arg0, %c0_i32, %c0_i32_0, %c0_i32_1 : i32, i32, i32, i32
  }
}

</mosaic_0001>

<bundles_post_ra>
// kernel: tpu_custom_call.1
= control target key start
LH: loop header
LB: loop body
LE: loop exit
PB: predicated region body
PF: predicated region fallthrough
CT: control target
= control target key end

     0   :  { %7 = vsyncpa [#allocation3], 0  ;;  %s254_s0 = inlined_call_operand.hbm [shape: f32[16,128], index: 0, kind: input, shape index: {}]   ;;  %s255_s1 = inlined_call_operand.hbm [shape: f32[16,128], index: 1, kind: input, shape index: {}]   ;;  %s256_s2 = inlined_call_operand.hbm [shape: f32[1,2,8,128], index: 2, kind: output, shape index: {}]  }
   0x1   :  { %8 = vsyncpa [#allocation6], 0 }
   0x2   :  { %9 = vsyncpa [#allocation4], 0  ;;  %s216_s9 = smov [#allocation2]  }
   0x3   :  { %s21_s10 = sshll.u32 %s216_s9, 4  ;;  %s22_s10 = int_to_ptr.vmem [resolvable:$true] %s21_s10 }
   0x4   :  { %s158_s11 = scalar_lea.vmem %s22_s10, 256  ;;  %p163_p1 = scmp.lt.s32.totalorder %s22_s10, %s22_s10 }
   0x5   :  { %p159_p0 = scmp.ne.s32.totalorder %s22_s10, %s158_s11  ;;  %p164_p2 = scmp.lt.s32.totalorder %s158_s11, %s158_s11 }
   0x7   :  { %p165_p3 = por %p164_p2, %p163_p1 }
   0x9   :  { %p166_p4 = pnand %p165_p3, %p159_p0 }
   0xb   :  { %169 = shalt.err (!%p166_p4)
}
   0xc   :  { %s217_s12 = smov 128   ;;  %s218_s13 = smov 8  }
   0xd   :  { %27 = dma.hbm_to_vmem [thread:$0]  %s254_s0, 256, %s22_s10, [#allocation3], %s217_s12, %s217_s12, %s218_s13  }
   0xe   :  { %s219_s16 = smov [#allocation5]  }
   0xf   :  { %s39_s17 = sshll.u32 %s219_s16, 4  ;;  %s40_s17 = int_to_ptr.vmem [resolvable:$true] %s39_s17 }
  0x10   :  { %s178_s18 = scalar_lea.vmem %s40_s17, 256  ;;  %p183_p6 = scmp.lt.s32.totalorder %s40_s17, %s40_s17 }
  0x11   :  { %p179_p5 = scmp.ne.s32.totalorder %s40_s17, %s178_s18  ;;  %p184_p7 = scmp.lt.s32.totalorder %s178_s18, %s178_s18 }
  0x13   :  { %p185_p8 = por %p184_p7, %p183_p6 }
  0x15   :  { %p186_p9 = pnand %p185_p8, %p179_p5 }
  0x17   :  { %189 = shalt.err (!%p186_p9)
}
  0x18   :  { %45 = dma.hbm_to_vmem [thread:$0]  %s255_s1, 256, %s40_s17, [#allocation6], %s217_s12, %s217_s12, %s218_s13  }
  0x19   :  { %210 = dma.done.wait [#allocation3], 256  }
  0x1a   :  { %211 = vsyncadd [#allocation3], 4294967040 }
  0x1b   :  { %212 = dma.done.wait [#allocation6], 256  }
  0x1c   :  { %213 = vsyncadd [#allocation6], 4294967040  ;;  %v71_v0 = vld [vmem:[#allocation2] sm:$0xff]  ;;  %v72_v1 = vld [vmem:[#allocation2 + $0x8] sm:$0xff]  ;;  %s220_s0 = smov [#allocation7]  }
  0x1d   :  { %v73_v2 = vld [vmem:[#allocation5] sm:$0xff]  ;;  %v74_v3 = vld [vmem:[#allocation5 + $0x8] sm:$0xff]  ;;  %s127_s21 = sshll.u32 %s220_s0, 4  ;;  %s128_s21 = int_to_ptr.vmem [resolvable:$true] %s127_s21 }
  0x1e   :  { %v75_v4 = vmul.f32 %v73_v2, %v71_v0  ;;  %v77_v5 = vadd.f32 %v73_v2, %v71_v0  ;;  %v76_v6 = vmul.f32 %v74_v3, %v72_v1  ;;  %v78_v7 = vadd.f32 %v74_v3, %v72_v1  ;;  %s190_s1 = scalar_lea.vmem %s128_s21, 256  ;;  %p195_p11 = scmp.lt.s32.totalorder %s128_s21, %s128_s21 }
  0x1f   :  { %p191_p10 = scmp.ne.s32.totalorder %s128_s21, %s190_s1  ;;  %p196_p12 = scmp.lt.s32.totalorder %s190_s1, %s190_s1 }
  0x20   :  { %v80_v8 = vadd.f32 %v76_v6, %v75_v4  ;;  %v85_v9 = vadd.f32 %v78_v7, %v77_v5 }
  0x21   :  { %p197_p13 = por %p196_p12, %p195_p11 }
  0x22   :  { %82 = vst [vmem:[#allocation7] sm:$0xff] %v80_v8  ;;  %87 = vst [vmem:[#allocation7 + $0x8] sm:$0xff] %v85_v9 }
  0x23   :  { %p198_p0 = pnand %p197_p13, %p191_p10 }
  0x25   :  { %201 = shalt.err (!%p198_p0)
}
  0x26   :  { %133 = dma.vmem_to_hbm [thread:$0]  %s128_s21, 256, %s256_s2, [#allocation4], %s217_s12, %s217_s12, %s218_s13  }
  0x27   :  { %214 = dma.done.wait [#allocation4], 256  }
  0x28   :  { %215 = vsyncadd [#allocation4], 4294967040 }
  0x29   :  { %137 = vsyncpa [#allocation3], 1 }
  0x2a   :  { %138 = vsyncpa [#allocation6], 1 }
  0x2b   :  { %139 = vsyncpa [#allocation4], 1 }

</bundles_post_ra>
